<compile_context>
chip_gen: v5e
topology: v5e:2x2
jax: 0.10.0
libtpu: 0.0.40
codegen_flags: <defaults>
</compile_context>

<pallas_src>
import jax
import jax.numpy as jnp
from jax import lax
from jax.experimental import pallas as pl
from jax.experimental.pallas import tpu as pltpu

_LANE = 128
_SUBLANE = 16  # multiple of both the f32 (8) and bf16 (16) sublane packing


def _round_up(n, m):
    return ((n + m - 1) // m) * m


def encoder_kernel(x_ref, w_ref, b_ref, o_ref):
    """One batch tile: o = ReLU(x @ W^T + b).

    x_ref: (TB, D_in)     activation tile (f32 or bf16)
    w_ref: (D_pad, D_in)  weight in PyTorch layout (no transpose) — VMEM-resident
    b_ref: (1, D_pad)     bias (f32) — VMEM-resident
    o_ref: (TB, D_pad)    lane-dense output tile
    """
    # Contract over the shared D_in axis of both operands; the MXU takes either
    # operand orientation, so no transpose (and no extra HBM pass) is needed.
    acc = lax.dot_general(
        x_ref[...],
        w_ref[...],
        dimension_numbers=(((1,), (1,)), ((), ())),
        preferred_element_type=jnp.float32,
    )
    # f32 epilogue (bias add + ReLU) regardless of matmul operand dtype.
    o_ref[...] = jnp.maximum(acc + b_ref[...], 0.0).astype(o_ref.dtype)


def encoder_forward(x, weight, bias, *, block_b=512, matmul_dtype=None):
    """ReLU(x @ weight.T + bias) via a Pallas TPU kernel.

    x:      (B, D_in)
    weight: (D_emb, D_in)  PyTorch nn.Linear layout (NOT transposed here)
    bias:   (D_emb,)
    matmul_dtype: pass jnp.bfloat16 to run the MXU in bf16 (v6e/v7x);
                  accumulation and epilogue stay f32.
    """
    B, D_in = x.shape
    D_emb = weight.shape[0]
    out_dtype = x.dtype

    # --- lane-dense output: pad D_emb up to a multiple of 128 lanes ----------
    D_pad = _round_up(D_emb, _LANE)
    # TODO(synk): in a real model, store weight/bias pre-padded (and already in
    # the kernel's preferred dtype) at parameter-init time so this tiny pad/cast
    # is not redone every call.
    if D_pad != D_emb:
        weight = jnp.pad(weight, ((0, D_pad - D_emb), (0, 0)))
        bias = jnp.pad(bias, (0, D_pad - D_emb))
    bias2d = bias.astype(jnp.float32).reshape(1, D_pad)

    if matmul_dtype is not None:
        x = x.astype(matmul_dtype)
        weight = weight.astype(matmul_dtype)

    # --- batch tiling: parallel grid axis; W/bias resident at block (0, 0) ---
    tb = _round_up(min(block_b, _round_up(B, _SUBLANE)), _SUBLANE)
    B_pad = _round_up(B, tb)
    if B_pad != B:
        x = jnp.pad(x, ((0, B_pad - B), (0, 0)))  # padded rows sliced off below
    grid = (B_pad // tb,)

    # VMEM budget: double-buffered x/out tiles + resident weight & bias.
    x_bytes = jnp.dtype(x.dtype).itemsize
    w_bytes = jnp.dtype(weight.dtype).itemsize
    o_bytes = jnp.dtype(out_dtype).itemsize
    est = (2 * tb * D_in * x_bytes
           + 2 * tb * D_pad * o_bytes
           + D_pad * D_in * w_bytes
           + D_pad * 4)
    vmem_limit = int(min(max(4 * est, 16 * 2**20), 48 * 2**20))

    cost = pl.CostEstimate(
        flops=2 * B_pad * D_pad * D_in + 2 * B_pad * D_pad,
        transcendentals=0,
        bytes_accessed=(B_pad * D_in * x_bytes
                        + D_pad * D_in * w_bytes
                        + D_pad * 4
                        + B_pad * D_pad * o_bytes),
    )

    out = pl.pallas_call(
        encoder_kernel,
        out_shape=jax.ShapeDtypeStruct((B_pad, D_pad), out_dtype),
        grid_spec=pltpu.PrefetchScalarGridSpec(
            num_scalar_prefetch=0,
            grid=grid,
            in_specs=[
                pl.BlockSpec((tb, D_in), lambda i: (i, 0)),     # x: tiled over batch
                pl.BlockSpec((D_pad, D_in), lambda i: (0, 0)),  # W: resident
                pl.BlockSpec((1, D_pad), lambda i: (0, 0)),     # bias: resident
            ],
            out_specs=pl.BlockSpec((tb, D_pad), lambda i: (i, 0)),
        ),
        compiler_params=pltpu.CompilerParams(
            dimension_semantics=("parallel",),  # batch tiles shard across TCs (v7x)
            vmem_limit_bytes=vmem_limit,
        ),
        cost_estimate=cost,
    )(x, weight, bias2d)

    return out[:B, :D_emb]


if __name__ == "__main__":
    key = jax.random.PRNGKey(0)
    k_x, k_w, k_b = jax.random.split(key, 3)

    batch = 8
    input_dim = 32
    embedding_dim = 16

    x = jax.random.normal(k_x, (batch, input_dim), dtype=jnp.float32)
    # Deterministic parameter init (mimics nn.Linear's uniform(-1/sqrt(fan_in), .))
    bound = 1.0 / jnp.sqrt(jnp.float32(input_dim))
    weight = jax.random.uniform(
        k_w, (embedding_dim, input_dim), minval=-bound, maxval=bound, dtype=jnp.float32
    )
    bias = jax.random.uniform(
        k_b, (embedding_dim,), minval=-bound, maxval=bound, dtype=jnp.float32
    )

    ref = jnp.maximum(x @ weight.T + bias, 0.0)

    # f32 matmul path (matches PyTorch numerics tightly).
    out = jax.block_until_ready(encoder_forward(x, weight, bias))
    assert out.shape == (batch, embedding_dim)
    assert jnp.allclose(out, ref, atol=1e-5, rtol=1e-5)

    # bf16-operand path (v6e/v7x MXU-friendly), f32 accumulate + f32 epilogue.
    out_bf16 = jax.block_until_ready(
        encoder_forward(x, weight, bias, matmul_dtype=jnp.bfloat16)
    )
    assert out_bf16.shape == (batch, embedding_dim)
    assert jnp.allclose(out_bf16, ref, atol=1e-1, rtol=1e-1)

    print("KERNEL_OK")
</pallas_src>

<mosaic_0001>
module attributes {stable_mosaic.version = 11 : i64} {
  func.func @encoder_kernel(%arg0: i32, %arg1: memref<16x32xf32, #tpu.memory_space<vmem>>, %arg2: memref<128x32xf32, #tpu.memory_space<vmem>>, %arg3: memref<1x128xf32, #tpu.memory_space<vmem>>, %arg4: memref<16x128xf32, #tpu.memory_space<vmem>>) attributes {dimension_semantics = [#tpu.dimension_semantics<parallel>], iteration_bounds = array<i64: 1>, scalar_prefetch = 0 : i64, scratch_operands = 0 : i64, tpu.core_type = #tpu.core_type<tc>, window_params = [{transform_indices = @transform_0, window_bounds = array<i64: 16, 32>}, {pipeline_mode = #tpu.pipeline_mode<synchronous>, transform_indices = @transform_1, window_bounds = array<i64: 128, 32>}, {pipeline_mode = #tpu.pipeline_mode<synchronous>, transform_indices = @transform_2, window_bounds = array<i64: 1, 128>}, {transform_indices = @transform_3, window_bounds = array<i64: 16, 128>}]} {
    %c0 = arith.constant 0 : index
    %c0_0 = arith.constant 0 : index
    %0 = vector.load %arg1[%c0, %c0_0] : memref<16x32xf32, #tpu.memory_space<vmem>>, vector<16x32xf32>
    %c0_1 = arith.constant 0 : index
    %c0_2 = arith.constant 0 : index
    %1 = vector.load %arg2[%c0_1, %c0_2] : memref<128x32xf32, #tpu.memory_space<vmem>>, vector<128x32xf32>
    %cst = arith.constant dense<0.000000e+00> : vector<16x128xf32>
    %2 = tpu.matmul %0, %1, %cst {dimension_numbers = #tpu.dot_dimension_numbers<[1], [1], [0], [0], [0, 0, 1, 0], [], []>} : vector<16x32xf32>, vector<128x32xf32>, vector<16x128xf32> -> vector<16x128xf32>
    %c0_3 = arith.constant 0 : index
    %c0_4 = arith.constant 0 : index
    %3 = vector.load %arg3[%c0_3, %c0_4] : memref<1x128xf32, #tpu.memory_space<vmem>>, vector<1x128xf32>
    %4 = vector.broadcast %3 : vector<1x128xf32> to vector<16x128xf32>
    %5 = arith.addf %2, %4 : vector<16x128xf32>
    %cst_5 = arith.constant 0.000000e+00 : f32
    %6 = vector.broadcast %cst_5 : f32 to vector<16x128xf32>
    %7 = arith.maximumf %5, %6 : vector<16x128xf32>
    %c0_6 = arith.constant 0 : index
    %c0_7 = arith.constant 0 : index
    %8 = vector.load %arg4[%c0_6, %c0_7] : memref<16x128xf32, #tpu.memory_space<vmem>>, vector<16x128xf32>
    tpu.vector_store %arg4[%c0_6, %c0_7], %7 {strides = array<i32>} : memref<16x128xf32, #tpu.memory_space<vmem>>, vector<16x128xf32>,
    return
  }
  func.func @transform_0(%arg0: i32) -> (i32, i32) {
    %c0_i32 = arith.constant 0 : i32
    %c0_i32_0 = arith.constant 0 : i32
    return %arg0, %c0_i32 : i32, i32
  }
  func.func @transform_1(%arg0: i32) -> (i32, i32) {
    %c0_i32 = arith.constant 0 : i32
    %c0_i32_0 = arith.constant 0 : i32
    %c0_i32_1 = arith.constant 0 : i32
    return %c0_i32, %c0_i32_0 : i32, i32
  }
  func.func @transform_2(%arg0: i32) -> (i32, i32) {
    %c0_i32 = arith.constant 0 : i32
    %c0_i32_0 = arith.constant 0 : i32
    %c0_i32_1 = arith.constant 0 : i32
    return %c0_i32, %c0_i32_0 : i32, i32
  }
  func.func @transform_3(%arg0: i32) -> (i32, i32) {
    %c0_i32 = arith.constant 0 : i32
    %c0_i32_0 = arith.constant 0 : i32
    return %arg0, %c0_i32 : i32, i32
  }
}

</mosaic_0001>

<bundles_post_ra>
// kernel: tpu_custom_call.1
= control target key start
LH: loop header
LB: loop body
LE: loop exit
PB: predicated region body
PF: predicated region fallthrough
CT: control target
= control target key end

     0   :  { %vm37_vm0 = vcmask 261120   ;;  %s318_s0 = inlined_call_operand.vmem [shape: f32[16,32], index: 0, kind: input, shape index: {}]   ;;  %s319_s1 = inlined_call_operand.vmem [shape: f32[128,32], index: 1, kind: input, shape index: {}]   ;;  %s320_s2 = inlined_call_operand.vmem [shape: f32[1,128], index: 2, kind: input, shape index: {}]   ;;  %s321_s3 = inlined_call_operand.hbm [shape: f32[16,128], index: 3, kind: output, shape index: {}]  }
   0x1   :  { %v32_v0 = vld [vmem:[%s319_s1 + $0x78] sm:$0xff]  ;;  %v31_v1 = vld [vmem:[%s319_s1 + $0x70] sm:$0xff] }
   0x2   :  { %137 = vmatpush.xpose.msk.msra.mxu0 %vm37_vm0, %v32_v0  ;;  %155 = vmatpush.xpose.msk.msra.mxu1 %vm37_vm0, %v32_v0 }
   0x3   :  { %8 = vsyncpa [#allocation3], 0  ;;  %v30_v2 = vld [vmem:[%s319_s1 + $0x68] sm:$0xff]  ;;  %v29_v3 = vld [vmem:[%s319_s1 + $0x60] sm:$0xff]  ;;  %s125_s26 = sshll.u32 %s321_s3, 4  ;;  %s203_s27 = smov 8   ;;  %s126_s26 = int_to_ptr.hbm [resolvable:$true] %s125_s26 }
   0x4   :  { %v28_v4 = vld [vmem:[%s319_s1 + $0x58] sm:$0xff]  ;;  %v27_v5 = vld [vmem:[%s319_s1 + $0x50] sm:$0xff]  ;;  %v26_v6 = vld [vmem:[%s319_s1 + $0x48] sm:$0xff] }
   0x5   :  { %v25_v7 = vld [vmem:[%s319_s1 + $0x40] sm:$0xff]  ;;  %v24_v8 = vld [vmem:[%s319_s1 + $0x38] sm:$0xff]  ;;  %v23_v9 = vld [vmem:[%s319_s1 + $0x30] sm:$0xff] }
   0x6   :  { %138 = vmatpush.xpose.msk.msra.mxu0 %vm37_vm0, %v31_v1  ;;  %156 = vmatpush.xpose.msk.msra.mxu1 %vm37_vm0, %v31_v1  ;;  %v22_v10 = vld [vmem:[%s319_s1 + $0x28] sm:$0xff]  ;;  %v21_v11 = vld [vmem:[%s319_s1 + $0x20] sm:$0xff]  ;;  %v20_v12 = vld [vmem:[%s319_s1 + $0x18] sm:$0xff] }
   0x7   :  { %v19_v13 = vld [vmem:[%s319_s1 + $0x10] sm:$0xff]  ;;  %v18_v14 = vld [vmem:[%s319_s1 + $0x8] sm:$0xff]  ;;  %v17_v15 = vld [vmem:[%s319_s1] sm:$0xff]  ;;  %s201_s1 = smov [#allocation2]  }
   0x8   :  { %v15_v16 = vld [vmem:[%s318_s0] sm:$0xff]  ;;  %v16_v17 = vld [vmem:[%s318_s0 + $0x8] sm:$0xff]  ;;  %s123_s23 = sshll.u32 %s201_s1, 4  ;;  %s202_s0 = smov 128   ;;  %s124_s23 = int_to_ptr.vmem [resolvable:$true] %s123_s23 }
   0x9   :  { %v174_v18 = vld [vmem:[%s320_s2] ss:$0 sm:$0xff] }
   0xa   :  { %139 = vmatpush.xpose.msk.msra.mxu0 %vm37_vm0, %v30_v2  ;;  %157 = vmatpush.xpose.msk.msra.mxu1 %vm37_vm0, %v30_v2 }
   0xe   :  { %140 = vmatpush.xpose.msk.msra.mxu0 %vm37_vm0, %v29_v3  ;;  %158 = vmatpush.xpose.msk.msra.mxu1 %vm37_vm0, %v29_v3 }
  0x12   :  { %141 = vmatpush.xpose.msk.msra.mxu0 %vm37_vm0, %v28_v4  ;;  %159 = vmatpush.xpose.msk.msra.mxu1 %vm37_vm0, %v28_v4 }
  0x16   :  { %142 = vmatpush.xpose.msk.msra.mxu0 %vm37_vm0, %v27_v5  ;;  %160 = vmatpush.xpose.msk.msra.mxu1 %vm37_vm0, %v27_v5 }
  0x1a   :  { %143 = vmatpush.xpose.msk.msra.mxu0 %vm37_vm0, %v26_v6  ;;  %161 = vmatpush.xpose.msk.msra.mxu1 %vm37_vm0, %v26_v6 }
  0x1e   :  { %144 = vmatpush.xpose.msk.msra.mxu0 %vm37_vm0, %v25_v7  ;;  %162 = vmatpush.xpose.msk.msra.mxu1 %vm37_vm0, %v25_v7 }
  0x22   :  { %145 = vmatpush.xpose.msk.msra.mxu0 %vm37_vm0, %v24_v8  ;;  %163 = vmatpush.xpose.msk.msra.mxu1 %vm37_vm0, %v24_v8 }
  0x26   :  { %146 = vmatpush.xpose.msk.msra.mxu0 %vm37_vm0, %v23_v9  ;;  %164 = vmatpush.xpose.msk.msra.mxu1 %vm37_vm0, %v23_v9 }
  0x2a   :  { %147 = vmatpush.xpose.msk.msra.mxu0 %vm37_vm0, %v22_v10  ;;  %165 = vmatpush.xpose.msk.msra.mxu1 %vm37_vm0, %v22_v10 }
  0x2e   :  { %148 = vmatpush.xpose.msk.msra.mxu0 %vm37_vm0, %v21_v11  ;;  %166 = vmatpush.xpose.msk.msra.mxu1 %vm37_vm0, %v21_v11 }
  0x32   :  { %149 = vmatpush.xpose.msk.msra.mxu0 %vm37_vm0, %v20_v12  ;;  %167 = vmatpush.xpose.msk.msra.mxu1 %vm37_vm0, %v20_v12 }
  0x36   :  { %150 = vmatpush.xpose.msk.msra.mxu0 %vm37_vm0, %v19_v13  ;;  %168 = vmatpush.xpose.msk.msra.mxu1 %vm37_vm0, %v19_v13 }
  0x3a   :  { %151 = vmatpush.xpose.msk.msra.mxu0 %vm37_vm0, %v18_v14  ;;  %169 = vmatpush.xpose.msk.msra.mxu1 %vm37_vm0, %v18_v14 }
  0x3e   :  { %152 = vmatpush.xpose.msk.msra.mxu0 %vm37_vm0, %v17_v15  ;;  %170 = vmatpush.xpose.msk.msra.mxu1 %vm37_vm0, %v17_v15 }
  0x41   :  { %153 = vmatmul.msk.f32.vlgmr.msra.gmra.mxu0 %vm37_vm0, %v15_v16  ;;  %154 = vmatmul.msk.f32.vlgmr.msra.gmra.mxu1 %vm37_vm0, %v16_v17 }
  0xbe   :  { %v109_v19 = vpop.f32.mrf.mxu0  ;;  %v112_v20 = vpop.f32.mrf.mxu1 }
  0xbf   :  { %v110_v21 = vadd.f32 %v174_v18, %v109_v19  ;;  %v113_v22 = vadd.f32 %v174_v18, %v112_v20 }
  0xc1   :  { %v115_v23 = vmax.f32 %v110_v21, 0.0  ;;  %v116_v24 = vmax.f32 %v113_v22, 0.0 }
  0xc3   :  { %117 = vst [vmem:[#allocation2] sm:$0xff] %v115_v23 }
  0xc4   :  { %118 = vst [vmem:[#allocation2 + $0x8] sm:$0xff] %v116_v24 }
  0xc5   :  { %131 = dma.vmem_to_hbm [thread:$0]  %s124_s23, 256, %s126_s26, [#allocation3], %s202_s0, %s202_s0, %s203_s27  }
  0xc6   :  { %199 = dma.done.wait [#allocation3], 256  }
  0xc7   :  { %200 = vsyncadd [#allocation3], 4294967040 }
  0xc8   :  { %136 = vsyncpa [#allocation3], 1 }

</bundles_post_ra>
